<compile_context>
chip_gen: v7x
topology: tpu7x:2x2x1
jax: 0.10.0
libtpu: 0.0.40
codegen_flags: <defaults>
</compile_context>

<pallas_src>
import functools
import math

import jax
import jax.numpy as jnp
from jax import lax
from jax.experimental import pallas as pl
from jax.experimental.pallas import tpu as pltpu


def _flash_attn_kernel(xq_ref, xkv_ref, wq_ref, wk_ref, wv_ref, wo_ref,
                       bq_ref, bv_ref, bo_ref, o_ref,
                       q_sc, m_sc, l_sc, acc_sc, *, scale):
    """Flash-style single-head self-attention + residual for one (batch, q-tile)."""
    ki = pl.program_id(2)

    # ---- per-(batch, q-tile) init: project Q once, reset online-softmax state ----
    @pl.when(ki == 0)
    def _():
        xq = xq_ref[0].astype(jnp.bfloat16)                              # (tq, C)
        q = jnp.dot(xq, wq_ref[...], preferred_element_type=jnp.float32)
        q = (q + bq_ref[...]) * scale                                    # fold 1/sqrt(C) into q
        q_sc[...] = q.astype(jnp.bfloat16)
        m_sc[...] = jnp.full_like(m_sc, -jnp.inf)
        l_sc[...] = jnp.zeros_like(l_sc)
        acc_sc[...] = jnp.zeros_like(acc_sc)

    # ---- project this K/V tile (key bias cancels in softmax -> dropped) ----
    xkv = xkv_ref[0].astype(jnp.bfloat16)                                # (tk, C)
    k = jnp.dot(xkv, wk_ref[...], preferred_element_type=jnp.float32)
    v = jnp.dot(xkv, wv_ref[...], preferred_element_type=jnp.float32) + bv_ref[...]

    # scores (tq, tk): contract last dims directly -> no explicit k.T transpose
    s = lax.dot_general(q_sc[...], k.astype(jnp.bfloat16),
                        dimension_numbers=(((1,), (1,)), ((), ())),
                        preferred_element_type=jnp.float32)

    # ---- online softmax update (f32 statistics) ----
    m_prev = m_sc[...]
    m_new = jnp.maximum(m_prev, jnp.max(s, axis=-1, keepdims=True))
    alpha = jnp.exp(m_prev - m_new)
    p = jnp.exp(s - m_new)
    l_sc[...] = alpha * l_sc[...] + jnp.sum(p, axis=-1, keepdims=True)
    acc_sc[...] = alpha * acc_sc[...] + jnp.dot(
        p.astype(jnp.bfloat16), v.astype(jnp.bfloat16),
        preferred_element_type=jnp.float32)
    m_sc[...] = m_new

    # ---- finalize: normalize, out_proj, residual add ----
    @pl.when(ki == pl.num_programs(2) - 1)
    def _():
        attn = acc_sc[...] * pl.reciprocal(l_sc[...], approx=True)       # (tq, C) f32
        out = jnp.dot(attn.astype(jnp.bfloat16), wo_ref[...],
                      preferred_element_type=jnp.float32) + bo_ref[...]
        o_ref[0] = (out + xq_ref[0]).astype(o_ref.dtype)


def _pick_tile(s, pref):
    """Largest tile <= pref that divides s and is a multiple of 8 (or s itself)."""
    if s <= pref:
        return s
    t = pref - (pref % 8)
    while t >= 8:
        if s % t == 0:
            return t
        t -= 8
    return s


def vae_attention_block(x_nchw, params, *, tq=256, tk=512):
    """x_nchw: (N, C, H, W) float32. Returns (N, C, H, W)."""
    n, c, h, w = x_nchw.shape
    s = h * w
    tq = _pick_tile(s, tq)
    tk = _pick_tile(s, tk)

    # NCHW -> (N, S, C).  (A producer already in (N,S,C) layout could skip this.)
    x_nsc = jnp.transpose(x_nchw.reshape(n, c, s), (0, 2, 1))

    wq, wk, wv, wo, bq, bk, bv, bo = params
    del bk  # key bias cancels exactly in softmax
    # Cast MXU weight operands to bf16 once (halves weight DMA); biases stay f32.
    wq_b, wk_b, wv_b, wo_b = (p.astype(jnp.bfloat16) for p in (wq, wk, wv, wo))

    kernel = functools.partial(_flash_attn_kernel, scale=1.0 / math.sqrt(c))

    out_nsc = pl.pallas_call(
        kernel,
        out_shape=jax.ShapeDtypeStruct((n, s, c), x_nchw.dtype),
        grid_spec=pltpu.PrefetchScalarGridSpec(
            num_scalar_prefetch=0,
            grid=(n, s // tq, s // tk),
            in_specs=[
                pl.BlockSpec((1, tq, c), lambda b, qi, ki: (b, qi, 0)),  # x (Q + residual)
                pl.BlockSpec((1, tk, c), lambda b, qi, ki: (b, ki, 0)),  # x (K/V tile)
                pl.BlockSpec((c, c), lambda b, qi, ki: (0, 0)),          # wq
                pl.BlockSpec((c, c), lambda b, qi, ki: (0, 0)),          # wk
                pl.BlockSpec((c, c), lambda b, qi, ki: (0, 0)),          # wv
                pl.BlockSpec((c, c), lambda b, qi, ki: (0, 0)),          # wo
                pl.BlockSpec((1, c), lambda b, qi, ki: (0, 0)),          # bq
                pl.BlockSpec((1, c), lambda b, qi, ki: (0, 0)),          # bv
                pl.BlockSpec((1, c), lambda b, qi, ki: (0, 0)),          # bo
            ],
            out_specs=pl.BlockSpec((1, tq, c), lambda b, qi, ki: (b, qi, 0)),
            scratch_shapes=[
                pltpu.VMEM((tq, c), jnp.bfloat16),   # scaled Q tile
                pltpu.VMEM((tq, 1), jnp.float32),    # running max
                pltpu.VMEM((tq, 1), jnp.float32),    # running sum
                pltpu.VMEM((tq, c), jnp.float32),    # output accumulator
            ],
        ),
        compiler_params=pltpu.CompilerParams(
            dimension_semantics=("parallel", "parallel", "arbitrary")),
    )(x_nsc, x_nsc, wq_b, wk_b, wv_b, wo_b, bq, bv, bo)

    # (N, S, C) -> NCHW
    return jnp.transpose(out_nsc, (0, 2, 1)).reshape(n, c, h, w)


def init_params(key, channels):
    """Shapes of SelfAttention(1, channels): in_proj Linear(C,3C), out_proj Linear(C,C).
       Weights stored pre-transposed as (in, out) so the kernel does x @ W."""
    c = channels
    k1, k2, k3 = jax.random.split(key, 3)
    bound_in = 1.0 / math.sqrt(c)
    w_in = jax.random.uniform(k1, (3 * c, c), jnp.float32, -bound_in, bound_in)
    b_in = jax.random.uniform(k2, (3 * c,), jnp.float32, -bound_in, bound_in)
    w_out = jax.random.uniform(k3, (c, c), jnp.float32, -bound_in, bound_in)
    b_out = jnp.zeros((c,), jnp.float32)

    wq = w_in[0 * c:1 * c].T
    wk = w_in[1 * c:2 * c].T
    wv = w_in[2 * c:3 * c].T
    wo = w_out.T
    bq = b_in[0 * c:1 * c].reshape(1, c)
    bk = b_in[1 * c:2 * c].reshape(1, c)
    bv = b_in[2 * c:3 * c].reshape(1, c)
    bo = b_out.reshape(1, c)
    # TODO(synk): GroupNorm(32, C) params exist in the torch module but are unused by forward().
    return (wq, wk, wv, wo, bq, bk, bv, bo)


def _reference(x_nchw, params):
    """Pure-JAX f32 reference of the exact PyTorch forward (includes key bias)."""
    wq, wk, wv, wo, bq, bk, bv, bo = params
    n, c, h, w = x_nchw.shape
    x = jnp.transpose(x_nchw.reshape(n, c, h * w), (0, 2, 1))   # (N, S, C)
    q = x @ wq + bq
    k = x @ wk + bk
    v = x @ wv + bv
    scores = jnp.einsum("nsc,ntc->nst", q, k) / math.sqrt(c)
    p = jax.nn.softmax(scores, axis=-1)
    out = jnp.einsum("nst,ntc->nsc", p, v) @ wo + bo
    out = out + x
    return jnp.transpose(out, (0, 2, 1)).reshape(n, c, h, w)


if __name__ == "__main__":
    key = jax.random.PRNGKey(0)
    kx, kp = jax.random.split(key)

    N, C, H, W = 2, 32, 8, 8      # C=32 so GroupNorm(32, C) in __init__ is valid
    x = jax.random.normal(kx, (N, C, H, W), jnp.float32)
    params = init_params(kp, C)

    out = vae_attention_block(x, params)
    out = jax.block_until_ready(out)

    ref = _reference(x, params)
    assert out.shape == (N, C, H, W)
    # bf16 MXU operands + approx reciprocal -> relaxed tolerance vs. f32 reference.
    assert jnp.allclose(out, ref, atol=5e-2, rtol=5e-2)

    print("KERNEL_OK")
</pallas_src>

<mosaic_0001>
module attributes {stable_mosaic.version = 11 : i64} {
  func.func @_flash_attn_kernel(%arg0: i32, %arg1: i32, %arg2: i32, %arg3: memref<1x64x32xf32, #tpu.memory_space<vmem>>, %arg4: memref<1x64x32xf32, #tpu.memory_space<vmem>>, %arg5: memref<32x32xbf16, #tpu.memory_space<vmem>>, %arg6: memref<32x32xbf16, #tpu.memory_space<vmem>>, %arg7: memref<32x32xbf16, #tpu.memory_space<vmem>>, %arg8: memref<32x32xbf16, #tpu.memory_space<vmem>>, %arg9: memref<1x32xf32, #tpu.memory_space<vmem>>, %arg10: memref<1x32xf32, #tpu.memory_space<vmem>>, %arg11: memref<1x32xf32, #tpu.memory_space<vmem>>, %arg12: memref<1x64x32xf32, #tpu.memory_space<vmem>>, %arg13: memref<64x32xbf16, #tpu.memory_space<vmem>>, %arg14: memref<64x1xf32, #tpu.memory_space<vmem>>, %arg15: memref<64x1xf32, #tpu.memory_space<vmem>>, %arg16: memref<64x32xf32, #tpu.memory_space<vmem>>) attributes {dimension_semantics = [#tpu.dimension_semantics<parallel>, #tpu.dimension_semantics<parallel>, #tpu.dimension_semantics<arbitrary>], iteration_bounds = array<i64: 2, 1, 1>, scalar_prefetch = 0 : i64, scratch_operands = 4 : i64, tpu.core_type = #tpu.core_type<tc>, window_params = [{transform_indices = @transform_0, window_bounds = array<i64: 1, 64, 32>}, {transform_indices = @transform_1, window_bounds = array<i64: 1, 64, 32>}, {pipeline_mode = #tpu.pipeline_mode<synchronous>, transform_indices = @transform_2, window_bounds = array<i64: 32, 32>}, {pipeline_mode = #tpu.pipeline_mode<synchronous>, transform_indices = @transform_3, window_bounds = array<i64: 32, 32>}, {pipeline_mode = #tpu.pipeline_mode<synchronous>, transform_indices = @transform_4, window_bounds = array<i64: 32, 32>}, {pipeline_mode = #tpu.pipeline_mode<synchronous>, transform_indices = @transform_5, window_bounds = array<i64: 32, 32>}, {pipeline_mode = #tpu.pipeline_mode<synchronous>, transform_indices = @transform_6, window_bounds = array<i64: 1, 32>}, {pipeline_mode = #tpu.pipeline_mode<synchronous>, transform_indices = @transform_7, window_bounds = array<i64: 1, 32>}, {pipeline_mode = #tpu.pipeline_mode<synchronous>, transform_indices = @transform_8, window_bounds = array<i64: 1, 32>}, {transform_indices = @transform_9, window_bounds = array<i64: 1, 64, 32>}]} {
    %c0_i32 = arith.constant 0 : i32
    %0 = arith.cmpi eq, %arg2, %c0_i32 : i32
    %1 = arith.extui %0 : i1 to i32
    %c0_i32_0 = arith.constant 0 : i32
    %2 = arith.cmpi ne, %1, %c0_i32_0 : i32
    scf.if %2 {
      %c0_30 = arith.constant 0 : index
      %c0_31 = arith.constant 0 : index
      %c0_32 = arith.constant 0 : index
      %43 = vector.load %arg3[%c0_30, %c0_31, %c0_32] : memref<1x64x32xf32, #tpu.memory_space<vmem>>, vector<1x64x32xf32>
      %44 = vector.shape_cast %43 : vector<1x64x32xf32> to vector<64x32xf32>
      %45 = arith.truncf %44 : vector<64x32xf32> to vector<64x32xbf16>
      %c0_33 = arith.constant 0 : index
      %c0_34 = arith.constant 0 : index
      %46 = vector.load %arg5[%c0_33, %c0_34] : memref<32x32xbf16, #tpu.memory_space<vmem>>, vector<32x32xbf16>
      %cst_35 = arith.constant dense<0.000000e+00> : vector<64x32xf32>
      %47 = tpu.matmul %45, %46, %cst_35 {dimension_numbers = #tpu.dot_dimension_numbers<[1], [0], [0], [1], [0, 0, 1, 1], [], []>} : vector<64x32xbf16>, vector<32x32xbf16>, vector<64x32xf32> -> vector<64x32xf32>
      %c0_36 = arith.constant 0 : index
      %c0_37 = arith.constant 0 : index
      %48 = vector.load %arg9[%c0_36, %c0_37] : memref<1x32xf32, #tpu.memory_space<vmem>>, vector<1x32xf32>
      %49 = vector.broadcast %48 : vector<1x32xf32> to vector<64x32xf32>
      %50 = arith.addf %47, %49 : vector<64x32xf32>
      %cst_38 = arith.constant 0.176776692 : f32
      %51 = vector.broadcast %cst_38 : f32 to vector<64x32xf32>
      %52 = arith.mulf %50, %51 : vector<64x32xf32>
      %53 = arith.truncf %52 : vector<64x32xf32> to vector<64x32xbf16>
      %c0_39 = arith.constant 0 : index
      %c0_40 = arith.constant 0 : index
      %54 = vector.load %arg13[%c0_39, %c0_40] : memref<64x32xbf16, #tpu.memory_space<vmem>>, vector<64x32xbf16>
      tpu.vector_store %arg13[%c0_39, %c0_40], %53 {strides = array<i32>} : memref<64x32xbf16, #tpu.memory_space<vmem>>, vector<64x32xbf16>,
      %cst_41 = arith.constant 0xFF800000 : f32
      %55 = vector.broadcast %cst_41 : f32 to vector<64x1xf32>
      %c0_42 = arith.constant 0 : index
      %c0_43 = arith.constant 0 : index
      %56 = vector.load %arg14[%c0_42, %c0_43] : memref<64x1xf32, #tpu.memory_space<vmem>>, vector<64x1xf32>
      tpu.vector_store %arg14[%c0_42, %c0_43], %55 {strides = array<i32>} : memref<64x1xf32, #tpu.memory_space<vmem>>, vector<64x1xf32>,
      %cst_44 = arith.constant 0.000000e+00 : f32
      %57 = vector.broadcast %cst_44 : f32 to vector<64x1xf32>
      %c0_45 = arith.constant 0 : index
      %c0_46 = arith.constant 0 : index
      %58 = vector.load %arg15[%c0_45, %c0_46] : memref<64x1xf32, #tpu.memory_space<vmem>>, vector<64x1xf32>
      tpu.vector_store %arg15[%c0_45, %c0_46], %57 {strides = array<i32>} : memref<64x1xf32, #tpu.memory_space<vmem>>, vector<64x1xf32>,
      %cst_47 = arith.constant 0.000000e+00 : f32
      %59 = vector.broadcast %cst_47 : f32 to vector<64x32xf32>
      %c0_48 = arith.constant 0 : index
      %c0_49 = arith.constant 0 : index
      %60 = vector.load %arg16[%c0_48, %c0_49] : memref<64x32xf32, #tpu.memory_space<vmem>>, vector<64x32xf32>
      tpu.vector_store %arg16[%c0_48, %c0_49], %59 {strides = array<i32>} : memref<64x32xf32, #tpu.memory_space<vmem>>, vector<64x32xf32>,
    } else {
    }
    %c0 = arith.constant 0 : index
    %c0_1 = arith.constant 0 : index
    %c0_2 = arith.constant 0 : index
    %3 = vector.load %arg4[%c0, %c0_1, %c0_2] : memref<1x64x32xf32, #tpu.memory_space<vmem>>, vector<1x64x32xf32>
    %4 = vector.shape_cast %3 : vector<1x64x32xf32> to vector<64x32xf32>
    %5 = arith.truncf %4 : vector<64x32xf32> to vector<64x32xbf16>
    %c0_3 = arith.constant 0 : index
    %c0_4 = arith.constant 0 : index
    %6 = vector.load %arg6[%c0_3, %c0_4] : memref<32x32xbf16, #tpu.memory_space<vmem>>, vector<32x32xbf16>
    %cst = arith.constant dense<0.000000e+00> : vector<64x32xf32>
    %7 = tpu.matmul %5, %6, %cst {dimension_numbers = #tpu.dot_dimension_numbers<[1], [0], [0], [1], [0, 0, 1, 1], [], []>} : vector<64x32xbf16>, vector<32x32xbf16>, vector<64x32xf32> -> vector<64x32xf32>
    %c0_5 = arith.constant 0 : index
    %c0_6 = arith.constant 0 : index
    %8 = vector.load %arg7[%c0_5, %c0_6] : memref<32x32xbf16, #tpu.memory_space<vmem>>, vector<32x32xbf16>
    %cst_7 = arith.constant dense<0.000000e+00> : vector<64x32xf32>
    %9 = tpu.matmul %5, %8, %cst_7 {dimension_numbers = #tpu.dot_dimension_numbers<[1], [0], [0], [1], [0, 0, 1, 1], [], []>} : vector<64x32xbf16>, vector<32x32xbf16>, vector<64x32xf32> -> vector<64x32xf32>
    %c0_8 = arith.constant 0 : index
    %c0_9 = arith.constant 0 : index
    %10 = vector.load %arg10[%c0_8, %c0_9] : memref<1x32xf32, #tpu.memory_space<vmem>>, vector<1x32xf32>
    %11 = vector.broadcast %10 : vector<1x32xf32> to vector<64x32xf32>
    %12 = arith.addf %9, %11 : vector<64x32xf32>
    %c0_10 = arith.constant 0 : index
    %c0_11 = arith.constant 0 : index
    %13 = vector.load %arg13[%c0_10, %c0_11] : memref<64x32xbf16, #tpu.memory_space<vmem>>, vector<64x32xbf16>
    %14 = arith.truncf %7 : vector<64x32xf32> to vector<64x32xbf16>
    %cst_12 = arith.constant dense<0.000000e+00> : vector<64x64xf32>
    %15 = tpu.matmul %13, %14, %cst_12 {dimension_numbers = #tpu.dot_dimension_numbers<[1], [1], [0], [0], [0, 0, 1, 0], [], []>} : vector<64x32xbf16>, vector<64x32xbf16>, vector<64x64xf32> -> vector<64x64xf32>
    %c0_13 = arith.constant 0 : index
    %c0_14 = arith.constant 0 : index
    %16 = vector.load %arg14[%c0_13, %c0_14] : memref<64x1xf32, #tpu.memory_space<vmem>>, vector<64x1xf32>
    %cst_15 = arith.constant dense<0xFF800000> : vector<64xf32>
    %17 = vector.multi_reduction <maximumf>, %15, %cst_15 [1] : vector<64x64xf32> to vector<64xf32>
    %18 = vector.shape_cast %17 : vector<64xf32> to vector<64x1xf32>
    %19 = arith.maximumf %16, %18 : vector<64x1xf32>
    %20 = arith.subf %16, %19 : vector<64x1xf32>
    %21 = math.exp %20 : vector<64x1xf32>
    %22 = vector.broadcast %19 : vector<64x1xf32> to vector<64x64xf32>
    %23 = arith.subf %15, %22 : vector<64x64xf32>
    %24 = math.exp %23 : vector<64x64xf32>
    %c0_16 = arith.constant 0 : index
    %c0_17 = arith.constant 0 : index
    %25 = vector.load %arg15[%c0_16, %c0_17] : memref<64x1xf32, #tpu.memory_space<vmem>>, vector<64x1xf32>
    %26 = arith.mulf %21, %25 : vector<64x1xf32>
    %cst_18 = arith.constant dense<0.000000e+00> : vector<64xf32>
    %27 = vector.multi_reduction <add>, %24, %cst_18 [1] : vector<64x64xf32> to vector<64xf32>
    %28 = vector.shape_cast %27 : vector<64xf32> to vector<64x1xf32>
    %29 = arith.addf %26, %28 : vector<64x1xf32>
    %c0_19 = arith.constant 0 : index
    %c0_20 = arith.constant 0 : index
    %30 = vector.load %arg15[%c0_19, %c0_20] : memref<64x1xf32, #tpu.memory_space<vmem>>, vector<64x1xf32>
    tpu.vector_store %arg15[%c0_19, %c0_20], %29 {strides = array<i32>} : memref<64x1xf32, #tpu.memory_space<vmem>>, vector<64x1xf32>,
    %c0_21 = arith.constant 0 : index
    %c0_22 = arith.constant 0 : index
    %31 = vector.load %arg16[%c0_21, %c0_22] : memref<64x32xf32, #tpu.memory_space<vmem>>, vector<64x32xf32>
    %32 = vector.broadcast %21 : vector<64x1xf32> to vector<64x32xf32>
    %33 = arith.mulf %32, %31 : vector<64x32xf32>
    %34 = arith.truncf %24 : vector<64x64xf32> to vector<64x64xbf16>
    %35 = arith.truncf %12 : vector<64x32xf32> to vector<64x32xbf16>
    %cst_23 = arith.constant dense<0.000000e+00> : vector<64x32xf32>
    %36 = tpu.matmul %34, %35, %cst_23 {dimension_numbers = #tpu.dot_dimension_numbers<[1], [0], [0], [1], [0, 0, 1, 1], [], []>} : vector<64x64xbf16>, vector<64x32xbf16>, vector<64x32xf32> -> vector<64x32xf32>
    %37 = arith.addf %33, %36 : vector<64x32xf32>
    %c0_24 = arith.constant 0 : index
    %c0_25 = arith.constant 0 : index
    %38 = vector.load %arg16[%c0_24, %c0_25] : memref<64x32xf32, #tpu.memory_space<vmem>>, vector<64x32xf32>
    tpu.vector_store %arg16[%c0_24, %c0_25], %37 {strides = array<i32>} : memref<64x32xf32, #tpu.memory_space<vmem>>, vector<64x32xf32>,
    %c0_26 = arith.constant 0 : index
    %c0_27 = arith.constant 0 : index
    %39 = vector.load %arg14[%c0_26, %c0_27] : memref<64x1xf32, #tpu.memory_space<vmem>>, vector<64x1xf32>
    tpu.vector_store %arg14[%c0_26, %c0_27], %19 {strides = array<i32>} : memref<64x1xf32, #tpu.memory_space<vmem>>, vector<64x1xf32>,
    %c0_i32_28 = arith.constant 0 : i32
    %40 = arith.cmpi eq, %arg2, %c0_i32_28 : i32
    %41 = arith.extui %40 : i1 to i32
    %c0_i32_29 = arith.constant 0 : i32
    %42 = arith.cmpi ne, %41, %c0_i32_29 : i32
    scf.if %42 {
      %c0_30 = arith.constant 0 : index
      %c0_31 = arith.constant 0 : index
      %43 = vector.load %arg16[%c0_30, %c0_31] : memref<64x32xf32, #tpu.memory_space<vmem>>, vector<64x32xf32>
      %c0_32 = arith.constant 0 : index
      %c0_33 = arith.constant 0 : index
      %44 = vector.load %arg15[%c0_32, %c0_33] : memref<64x1xf32, #tpu.memory_space<vmem>>, vector<64x1xf32>
      %45 = tpu.reciprocal %44 {approx = true} : vector<64x1xf32> -> vector<64x1xf32>
      %46 = vector.broadcast %45 : vector<64x1xf32> to vector<64x32xf32>
      %47 = arith.mulf %43, %46 : vector<64x32xf32>
      %48 = arith.truncf %47 : vector<64x32xf32> to vector<64x32xbf16>
      %c0_34 = arith.constant 0 : index
      %c0_35 = arith.constant 0 : index
      %49 = vector.load %arg8[%c0_34, %c0_35] : memref<32x32xbf16, #tpu.memory_space<vmem>>, vector<32x32xbf16>
      %cst_36 = arith.constant dense<0.000000e+00> : vector<64x32xf32>
      %50 = tpu.matmul %48, %49, %cst_36 {dimension_numbers = #tpu.dot_dimension_numbers<[1], [0], [0], [1], [0, 0, 1, 1], [], []>} : vector<64x32xbf16>, vector<32x32xbf16>, vector<64x32xf32> -> vector<64x32xf32>
      %c0_37 = arith.constant 0 : index
      %c0_38 = arith.constant 0 : index
      %51 = vector.load %arg11[%c0_37, %c0_38] : memref<1x32xf32, #tpu.memory_space<vmem>>, vector<1x32xf32>
      %52 = vector.broadcast %51 : vector<1x32xf32> to vector<64x32xf32>
      %53 = arith.addf %50, %52 : vector<64x32xf32>
      %c0_39 = arith.constant 0 : index
      %c0_40 = arith.constant 0 : index
      %c0_41 = arith.constant 0 : index
      %54 = vector.load %arg3[%c0_39, %c0_40, %c0_41] : memref<1x64x32xf32, #tpu.memory_space<vmem>>, vector<1x64x32xf32>
      %55 = vector.shape_cast %54 : vector<1x64x32xf32> to vector<64x32xf32>
      %56 = arith.addf %53, %55 : vector<64x32xf32>
      %c0_42 = arith.constant 0 : index
      %c0_43 = arith.constant 0 : index
      %c0_44 = arith.constant 0 : index
      %57 = vector.load %arg12[%c0_42, %c0_43, %c0_44] : memref<1x64x32xf32, #tpu.memory_space<vmem>>, vector<1x64x32xf32>
      %58 = vector.shape_cast %57 : vector<1x64x32xf32> to vector<64x32xf32>
      %59 = vector.shape_cast %56 : vector<64x32xf32> to vector<1x64x32xf32>
      tpu.vector_store %arg12[%c0_42, %c0_43, %c0_44], %59 {strides = array<i32>} : memref<1x64x32xf32, #tpu.memory_space<vmem>>, vector<1x64x32xf32>,
    } else {
    }
    return
  }
  func.func @transform_0(%arg0: i32, %arg1: i32, %arg2: i32) -> (i32, i32, i32) {
    %c0_i32 = arith.constant 0 : i32
    %c0_i32_0 = arith.constant 0 : i32
    return %arg0, %arg1, %c0_i32 : i32, i32, i32
  }
  func.func @transform_1(%arg0: i32, %arg1: i32, %arg2: i32) -> (i32, i32, i32) {
    %c0_i32 = arith.constant 0 : i32
    %c0_i32_0 = arith.constant 0 : i32
    return %arg0, %arg2, %c0_i32 : i32, i32, i32
  }
  func.func @transform_2(%arg0: i32, %arg1: i32, %arg2: i32) -> (i32, i32) {
    %c0_i32 = arith.constant 0 : i32
    %c0_i32_0 = arith.constant 0 : i32
    %c0_i32_1 = arith.constant 0 : i32
    return %c0_i32, %c0_i32_0 : i32, i32
  }
  func.func @transform_3(%arg0: i32, %arg1: i32, %arg2: i32) -> (i32, i32) {
    %c0_i32 = arith.constant 0 : i32
    %c0_i32_0 = arith.constant 0 : i32
    %c0_i32_1 = arith.constant 0 : i32
    return %c0_i32, %c0_i32_0 : i32, i32
  }
  func.func @transform_4(%arg0: i32, %arg1: i32, %arg2: i32) -> (i32, i32) {
    %c0_i32 = arith.constant 0 : i32
    %c0_i32_0 = arith.constant 0 : i32
    %c0_i32_1 = arith.constant 0 : i32
    return %c0_i32, %c0_i32_0 : i32, i32
  }
  func.func @transform_5(%arg0: i32, %arg1: i32, %arg2: i32) -> (i32, i32) {
    %c0_i32 = arith.constant 0 : i32
    %c0_i32_0 = arith.constant 0 : i32
    %c0_i32_1 = arith.constant 0 : i32
    return %c0_i32, %c0_i32_0 : i32, i32
  }
  func.func @transform_6(%arg0: i32, %arg1: i32, %arg2: i32) -> (i32, i32) {
    %c0_i32 = arith.constant 0 : i32
    %c0_i32_0 = arith.constant 0 : i32
    %c0_i32_1 = arith.constant 0 : i32
    return %c0_i32, %c0_i32_0 : i32, i32
  }
  func.func @transform_7(%arg0: i32, %arg1: i32, %arg2: i32) -> (i32, i32) {
    %c0_i32 = arith.constant 0 : i32
    %c0_i32_0 = arith.constant 0 : i32
    %c0_i32_1 = arith.constant 0 : i32
    return %c0_i32, %c0_i32_0 : i32, i32
  }
  func.func @transform_8(%arg0: i32, %arg1: i32, %arg2: i32) -> (i32, i32) {
    %c0_i32 = arith.constant 0 : i32
    %c0_i32_0 = arith.constant 0 : i32
    %c0_i32_1 = arith.constant 0 : i32
    return %c0_i32, %c0_i32_0 : i32, i32
  }
  func.func @transform_9(%arg0: i32, %arg1: i32, %arg2: i32) -> (i32, i32, i32) {
    %c0_i32 = arith.constant 0 : i32
    %c0_i32_0 = arith.constant 0 : i32
    return %arg0, %arg1, %c0_i32 : i32, i32, i32
  }
}

</mosaic_0001>

<bundles_post_ra>
// kernel: tpu_custom_call.1
= control target key start
LH: loop header
LB: loop body
LE: loop exit
PB: predicated region body
PF: predicated region fallthrough
CT: control target
= control target key end

     0   :  { %s1869_s30 = smov 0   ;;  %s1871_s10 = smov 0   ;;  %s2241_s0 = inlined_call_operand.vmem [shape: f32[2,64,32], index: 0, kind: input, shape index: {}]   ;;  %s2242_s1 = inlined_call_operand.vmem [shape: f32[2,64,32], index: 1, kind: input, shape index: {}]   ;;  %s2243_s2 = inlined_call_operand.vmem [shape: bf16[32,32], index: 2, kind: input, shape index: {}]   ;;  %s2244_s3 = inlined_call_operand.vmem [shape: bf16[32,32], index: 3, kind: input, shape index: {}]   ;;  %s2245_s4 = inlined_call_operand.vmem [shape: bf16[32,32], index: 4, kind: input, shape index: {}]   ;;  %s2246_s5 = inlined_call_operand.vmem [shape: bf16[32,32], index: 5, kind: input, shape index: {}]   ;;  %s2247_s6 = inlined_call_operand.vmem [shape: f32[1,32], index: 6, kind: input, shape index: {}]   ;;  %s2248_s7 = inlined_call_operand.vmem [shape: f32[1,32], index: 7, kind: input, shape index: {}]   ;;  %s2249_s8 = inlined_call_operand.vmem [shape: f32[1,32], index: 8, kind: input, shape index: {}]   ;;  %s2250_s9 = inlined_call_operand.vmem [shape: f32[2,64,32], index: 9, kind: output, shape index: {}]  }
   0x1   :  { %s1873_s11 = smov 0  }
   0x2 LB: > { %s38_s12 = sadd.s32 1, %s1810_s10  ;;  %p1531_p0 = scmp.ge.s32.totalorder %s1814_s11, 1  ;;  %s1814_s11 = sphi %s1873_s11, %s19_s11   ;;  %s1810_s10 = sphi %s1871_s10, %s2252_s10   ;;  %s1806_s30 = sphi %s1869_s30, %s2251_s30  }
   0x3   : > { %p40_p1 = scmp.ge.s32.totalorder %s38_s12, 2  ;;  %p332_p2 = scmp.lt.s32.totalorder %s1814_s11, 3 }
   0x5   : > { %s2254_s12 = smov (%p40_p1, %s38_s12), 0  ;;  %p333_p3 = pnand %p1531_p0, %p332_p2 }
   0x6   : > { %v1735_v0 = vld [vmem:[%s2243_s2] sm:$0xff] (!%p333_p3)   ;;  %p386_p4 = scmp.lt.s32.totalorder (!%p333_p3), %s1806_s30, 1  ;;  %v1736_v1 = vld [vmem:[%s2243_s2 + $0x8] sm:$0xff] (!%p333_p3)   ;;  %vm455_vm0 = vcmask (!%p333_p3), 261120   ;;  %vm549_vm1 = vcmask (!%p333_p3), 7168   ;;  %vm873_vm2 = vcmask (!%p333_p3), 523264  }
   0x7   : > { %336 = sbr.rel (%p333_p3) target bundleno = 1320 (0x528), region = 56  ;;  %1698 = vmatprep.subr.bf16.mxu1 (!%p333_p3), %v1735_v0  ;;  %1618 = vmatprep.subr.bf16.mxu0 (!%p333_p3), %v1735_v0  ;;  %v1737_v2 = vld [vmem:[%s2244_s3] sm:$0xff] (!%p333_p3)   ;;  %v1738_v11 = vld [vmem:[%s2244_s3 + $0x8] sm:$0xff] (!%p333_p3)  }
   0x8   : > { %1700 = vmatpush3.bf16.msra.mxu1 (!%p333_p3), %v1735_v0  ;;  %1619 = vmatpush3.bf16.msra.mxu0 (!%p333_p3), %v1735_v0  ;;  %v1538_v28 = vld [vmem:[%s2247_s6] ss:$0 sm:$0xff] (!%p333_p3) }
   0x9   : > { %1699 = vmatprep.subr.bf16.mxu1 (!%p333_p3), %v1736_v1  ;;  %1620 = vmatprep.subr.bf16.mxu0 (!%p333_p3), %v1736_v1 }
   0xc   : > { %1701 = vmatpush3.bf16.msra.mxu1 (!%p333_p3), %v1736_v1  ;;  %1621 = vmatpush3.bf16.msra.mxu0 (!%p333_p3), %v1736_v1 }
   0xd   : > { %1630 = vmatprep.subr.bf16.mxu1 (!%p333_p3), %v1737_v2 }
   0xe   : > { %s2256_s30 = smov (!%p386_p4, %s1806_s30), 1 }
   0xf   : > { %s1893_s17 = sshll.u32 %s2256_s30, 6 }
  0x10   : > { %s1902_s22 = scalar_lea.vmem %s2241_s0, %s1893_s17  ;;  %s1908_s25 = scalar_lea.vmem %s2242_s1, %s1893_s17 }
  0x11   : > { %v424_v3 = vld [vmem:[%s1902_s22 + $0x20] sm:$0xff]  ;;  %v425_v4 = vld [vmem:[%s1902_s22 + $0x28] sm:$0xff]  ;;  %v426_v5 = vld [vmem:[%s1902_s22 + $0x30] sm:$0xff]  ;;  %s2206_s28 = scalar_lea.vmem %s2250_s9, %s1893_s17 }
  0x12   : > { %v430_v6 = vpack.c.bf16 %v425_v4, %v424_v3  ;;  %v427_v7 = vld [vmem:[%s1902_s22 + $0x38] sm:$0xff]  ;;  %v574_v8 = vld [vmem:[%s1908_s25] sm:$0xff]  ;;  %v575_v9 = vld [vmem:[%s1908_s25 + $0x8] sm:$0xff] }
  0x13   : > { %v431_v10 = vpack.c.bf16 %v427_v7, %v426_v5  ;;  %v582_v12 = vpack.c.bf16 %v575_v9, %v574_v8  ;;  %v576_v13 = vld [vmem:[%s1908_s25 + $0x10] sm:$0xff]  ;;  %v577_v14 = vld [vmem:[%s1908_s25 + $0x18] sm:$0xff]  ;;  %v578_v15 = vld [vmem:[%s1908_s25 + $0x20] sm:$0xff] }
  0x14   : > { %1626 = vmatprep.mubr.msk.bf16.mxu1 %vm455_vm0, %v430_v6  ;;  %v1925_v16 = vld [vmem:[%s1902_s22] sm:$0xff]  ;;  %v1928_v17 = vld [vmem:[%s1902_s22 + $0x8] sm:$0xff]  ;;  %v1931_v18 = vld [vmem:[%s1902_s22 + $0x10] sm:$0xff]  ;;  %v1943_v23 = vpack.c.bf16 %v577_v14, %v576_v13 }
  0x15   : > { %1627 = vmatmul.mubr.msk.bf16.vlgmr.msra.gmra.mrb[0].mxu1 %vm455_vm0, %v431_v10  ;;  %v428_v19 = vpack.c.bf16 %v1928_v17, %v1925_v16  ;;  %v1937_v20 = vld [vmem:[%s1902_s22 + $0x18] sm:$0xff]  ;;  %v579_v21 = vld [vmem:[%s1908_s25 + $0x28] sm:$0xff]  ;;  %v580_v25 = vld [vmem:[%s1908_s25 + $0x30] sm:$0xff] }
  0x16   : > { %1631 = vmatpush3.bf16.msra.mxu1 %v1737_v2  ;;  %1634 = vmatprep.mubr.msk.bf16.mxu1 %vm455_vm0, %v582_v12  ;;  %v429_v22 = vpack.c.bf16 %v1937_v20, %v1931_v18  ;;  %v1946_v24 = vpack.c.bf16 %v579_v21, %v578_v15  ;;  %v581_v26 = vld [vmem:[%s1908_s25 + $0x38] sm:$0xff]  ;;  %v1739_v13 = vld [vmem:[%s2245_s4] sm:$0xff]   ;;  %v1740_v14 = vld [vmem:[%s2245_s4 + $0x8] sm:$0xff]   ;;  %v1816_v15 = vmov -inf  }
  0x17   : > { %1632 = vmatprep.subr.bf16.mxu1 %v1738_v11  ;;  %1622 = vmatprep.mubr.msk.bf16.mxu0 %vm455_vm0, %v428_v19  ;;  %v1955_v27 = vpack.c.bf16 %v581_v26, %v580_v25  ;;  %552 = vst.msk [vmem:[#allocation3 + $0x10] sm:$0xff] %vm549_vm1, %v1816_v15  ;;  %550 = vst.msk [vmem:[#allocation3] sm:$0xff] %vm549_vm1, %v1816_v15 }
  0x18   : > { %1623 = vmatmul.mubr.msk.bf16.vlgmr.msra.gmra.mrb[0].mxu0 %vm455_vm0, %v429_v22  ;;  %551 = vst.msk [vmem:[#allocation3 + $0x8] sm:$0xff] %vm549_vm1, %v1816_v15  ;;  %553 = vst.msk [vmem:[#allocation3 + $0x18] sm:$0xff] %vm549_vm1, %v1816_v15  ;;  %1642 = vmatprep.subr.bf16.mxu0 %v1739_v13 }
  0x19   : > { %1646 = vmatprep.mubr.msk.bf16.mxu0 %vm455_vm0, %v582_v12  ;;  %554 = vst.msk [vmem:[#allocation3 + $0x20] sm:$0xff] %vm549_vm1, %v1816_v15  ;;  %555 = vst.msk [vmem:[#allocation3 + $0x28] sm:$0xff] %vm549_vm1, %v1816_v15  ;;  %1643 = vmatpush3.bf16.msra.mxu0 %v1739_v13 }
  0x1a   : > { %1633 = vmatpush3.bf16.msra.mxu1 %v1738_v11  ;;  %556 = vst.msk [vmem:[#allocation3 + $0x30] sm:$0xff] %vm549_vm1, %v1816_v15  ;;  %557 = vst.msk [vmem:[#allocation3 + $0x38] sm:$0xff] %vm549_vm1, %v1816_v15  ;;  %1644 = vmatprep.subr.bf16.mxu0 %v1740_v14 }
  0x1d   : > { %1635 = vmatmul.mubr.msk.bf16.vlgmr.msra.gmra.mrb[4].mxu1 %vm455_vm0, %v1943_v23  ;;  %1645 = vmatpush3.bf16.msra.mxu0 %v1740_v14 }
  0x1e   : > { %1638 = vmatprep.mubr.msk.bf16.mxu1 %vm455_vm0, %v1946_v24 }
  0x20   : > { %1647 = vmatmul.mubr.msk.bf16.vlgmr.msra.gmra.mrb[4].mxu0 %vm455_vm0, %v1943_v23 }
  0x21   : > { %1650 = vmatprep.mubr.msk.bf16.mxu0 %vm455_vm0, %v1946_v24 }
  0x25   : > { %1639 = vmatmul.mubr.msk.bf16.gmra.mrb[8].mxu1 %vm455_vm0, %v1955_v27 }
  0x28   : > { %1651 = vmatmul.mubr.msk.bf16.gmra.mrb[8].mxu0 %vm455_vm0, %v1955_v27 }
  0xe8   : > { %v1628_v29 = vpop.f32.mrb[0].mxu1 }
  0xe9   : > { %v527_v30 = vadd.f32 %v1628_v29, %v1538_v28  ;;  %v518_v31 = vpop.f32.mrb[1].mxu1 }
  0xea   : > { %v519_v32 = vadd.f32 %v1538_v28, %v518_v31  ;;  %v1629_v33 = vpop.f32.mrb[2].mxu1 }
  0xeb   : > { %v530_v34 = vadd.f32 %v1629_v33, %v1538_v28  ;;  %v521_v35 = vpop.f32.mrb[3].mxu1  ;;  %v1624_v37 = vpop.f32.mrb[0].mxu0  ;;  %v539_v38 = vmul.f32 0.17677669, %v527_v30 }
  0xec   : > { %v522_v36 = vadd.f32 %v1538_v28, %v521_v35  ;;  %v511_v40 = vadd.f32 %v1624_v37, %v1538_v28  ;;  %v502_v41 = vpop.f32.mrb[1].mxu0  ;;  %v537_v42 = vmul.f32 0.17677669, %v519_v32  ;;  %v1818_v37 = vmov 0.0  }
  0xed   : > { %v540_v39 = vmul.f32 0.17677669, %v530_v34  ;;  %v503_v44 = vadd.f32 %v1538_v28, %v502_v41  ;;  %v1625_v45 = vpop.f32.mrb[2].mxu0  ;;  %558 = vst.msk [vmem:[#allocation4] sm:$0xff] %vm549_vm1, %v1818_v37  ;;  %559 = vst.msk [vmem:[#allocation4 + $0x8] sm:$0xff] %vm549_vm1, %v1818_v37 }
  0xee   : > { %v538_v43 = vmul.f32 0.17677669, %v522_v36  ;;  %v535_v47 = vmul.f32 0.17677669, %v511_v40  ;;  %v514_v48 = vadd.f32 %v1625_v45, %v1538_v28  ;;  %v505_v49 = vpop.f32.mrb[3].mxu0  ;;  %v1817_v36 = vmov 0  }
  0xef   : > { %v544_v46 = vpack.c.bf16 %v540_v39, %v539_v38  ;;  %v533_v52 = vmul.f32 0.17677669, %v503_v44  ;;  %v506_v53 = vadd.f32 %v1538_v28, %v505_v49  ;;  %1733 = vset.pattern.permute.xlu0 %v1817_v36  ;;  %1734 = vset.pattern.permute.xlu1 %v1817_v36  ;;  %560 = vst.msk [vmem:[#allocation4 + $0x10] sm:$0xff] %vm549_vm1, %v1818_v37  ;;  %561 = vst.msk [vmem:[#allocation4 + $0x18] sm:$0xff] %vm549_vm1, %v1818_v37  ;;  %v2046_v38 = vld [vmem:[#allocation3 + $0x10] sm:$0xff]  ;;  %v2048_v39 = vld [vmem:[#allocation3] sm:$0xff] }
  0xf0   : > { %v543_v50 = vpack.c.bf16 %v538_v43, %v537_v42  ;;  %v1636_v51 = vpop.f32.mrb[4].mxu1  ;;  %v536_v55 = vmul.f32 0.17677669, %v514_v48  ;;  %562 = vst.msk [vmem:[#allocation4 + $0x20] sm:$0xff] %vm549_vm1, %v1818_v37  ;;  %563 = vst.msk [vmem:[#allocation4 + $0x28] sm:$0xff] %vm549_vm1, %v1818_v37  ;;  %v2056_v44 = vld [vmem:[#allocation3 + $0x18] sm:$0xff] }
  0xf1   : > { %548 = vst.msk [vmem:[#allocation2 + $0x18] sm:$0xff] %vm455_vm0, %v544_v46  ;;  %v649_v54 = vpop.f32.mrb[5].mxu1  ;;  %v534_v57 = vmul.f32 0.17677669, %v506_v53  ;;  %566 = vst.msk [vmem:[#allocation5] sm:$0xff] %vm455_vm0, %v1818_v37  ;;  %v2063_v46 = vld [vmem:[#allocation3 + $0x8] sm:$0xff] }
  0xf2   : > { %547 = vst.msk [vmem:[#allocation2 + $0x10] sm:$0xff] %vm455_vm0, %v543_v50  ;;  %v1637_v56 = vpop.f32.mrb[6].mxu1  ;;  %v542_v60 = vpack.c.bf16 %v536_v55, %v535_v47  ;;  %567 = vst.msk [vmem:[#allocation5 + $0x8] sm:$0xff] %vm455_vm0, %v1818_v37  ;;  %v2081_v55 = vld [vmem:[#allocation3 + $0x20] sm:$0xff] }
  0xf3   : > { %v773_v58 = vpack.c.bf16 %v1637_v56, %v1636_v51  ;;  %v652_v59 = vpop.f32.mrb[7].mxu1  ;;  %v541_v62 = vpack.c.bf16 %v534_v57, %v533_v52  ;;  %564 = vst.msk [vmem:[#allocation4 + $0x30] sm:$0xff] %vm549_vm1, %v1818_v37  ;;  %565 = vst.msk [vmem:[#allocation4 + $0x38] sm:$0xff] %vm549_vm1, %v1818_v37  ;;  %v1648_v51 = vpop.f32.mrb[4].mxu0 }
  0xf4   : > { %v772_v61 = vpack.c.bf16 %v652_v59, %v649_v54  ;;  %546 = vst.msk [vmem:[#allocation2 + $0x8] sm:$0xff] %vm455_vm0, %v542_v60  ;;  %568 = vst.msk [vmem:[#allocation5 + $0x10] sm:$0xff] %vm455_vm0, %v1818_v37  ;;  %v737_v53 = vpop.f32.mrb[5].mxu0 }
  0xf5   : > { %545 = vst.msk [vmem:[#allocation2] sm:$0xff] %vm455_vm0, %v541_v62  ;;  %v792_v7 = vsel %vm455_vm0, %v773_v58, 0  ;;  %569 = vst.msk [vmem:[#allocation5 + $0x18] sm:$0xff] %vm455_vm0, %v1818_v37  ;;  %v1649_v56 = vpop.f32.mrb[6].mxu0 }
  0xf6   : > { %v789_v63 = vsel %vm455_vm0, %v772_v61, 0  ;;  %1702 = vmatprep.subr.msk.bf16.mxu1 %vm455_vm0, %v772_v61  ;;  %570 = vst.msk [vmem:[#allocation5 + $0x20] sm:$0xff] %vm455_vm0, %v1818_v37  ;;  %571 = vst.msk [vmem:[#allocation5 + $0x28] sm:$0xff] %vm455_vm0, %v1818_v37  ;;  %v740_v59 = vpop.f32.mrb[7].mxu0  ;;  %v2090_v61 = vld [vmem:[#allocation3 + $0x28] sm:$0xff] }
  0xf7   : > { %1655 = vmatpush3.bf16.xpose.msra.mxu1 %v789_v63  ;;  %572 = vst.msk [vmem:[#allocation5 + $0x30] sm:$0xff] %vm455_vm0, %v1818_v37  ;;  %573 = vst.msk [vmem:[#allocation5 + $0x38] sm:$0xff] %vm455_vm0, %v1818_v37 }
  0xf8   : > { %1703 = vmatprep.subr.msk.bf16.mxu1 %vm455_vm0, %v773_v58  ;;  %v1640_v0 = vpop.f32.mrb[8].mxu1  ;;  %v771_v12 = vld [vmem:[#allocation2 + $0x18] sm:$0xff]  ;;  %v1551_v58 = vld [vmem:[%s2248_s7] ss:$0 sm:$0xff] }
  0xf9   : > { %v665_v1 = vpop.f32.mrb[9].mxu1  ;;  %v770_v11 = vld [vmem:[#allocation2 + $0x10] sm:$0xff]  ;;  %v738_v62 = vadd.f32 %v1551_v58, %v737_v53  ;;  %v741_v63 = vadd.f32 %v1551_v58, %v740_v59 }
  0xfa   : > { %v1641_v2 = vpop.f32.mrb[10].mxu1 }
  0xfb   : > { %v775_v3 = vpack.c.bf16 %v1641_v2, %v1640_v0  ;;  %v668_v4 = vpop.f32.mrb[11].mxu1  ;;  %v769_v10 = vld [vmem:[#allocation2 + $0x8] sm:$0xff]  ;;  %v2096_v2 = vld [vmem:[#allocation3 + $0x30] sm:$0xff] }
  0xfc   : > { %v774_v5 = vpack.c.bf16 %v668_v4, %v665_v1  ;;  %v768_v6 = vld [vmem:[#allocation2] sm:$0xff]  ;;  %v1111_v4 = vpack.c.bf16 %v741_v63, %v738_v62 }
  0xfd   : > { %1662 = vmatprep.mubr.msk.bf16.mxu1 %vm455_vm0, %v768_v6  ;;  %v798_v9 = vsel %vm455_vm0, %v775_v3, 0 }
  0xfe   : > { %v795_v8 = vsel %vm455_vm0, %v774_v5, 0  ;;  %1670 = vmatprep.subr.bf16.mxu0 %v1111_v4 }
  0xff   : > { %1657 = vmatpush3.bf16.xpose.msra.mxu1 %v792_v7  ;;  %1671 = vmatpush3.bf16.msra.mxu0 %v1111_v4 }
 0x100   : > { %1704 = vmatprep.subr.msk.bf16.mxu1 %vm455_vm0, %v774_v5 }
 0x107   : > { %1659 = vmatpush3.bf16.xpose.msra.mxu1 %v795_v8  ;;  %v2105_v8 = vld [vmem:[#allocation3 + $0x38] sm:$0xff] }
 0x108   : > { %1705 = vmatprep.subr.msk.bf16.mxu1 %vm455_vm0, %v775_v3  ;;  %v746_v3 = vadd.f32 %v1648_v51, %v1551_v58 }
 0x10f   : > { %1661 = vmatpush3.bf16.xpose.msra.mxu1 %v798_v9  ;;  %v749_v9 = vadd.f32 %v1649_v56, %v1551_v58 }
 0x111   : > { %v1112_v15 = vpack.c.bf16 %v749_v9, %v746_v3 }
 0x113   : > { %1672 = vmatprep.subr.bf16.mxu0 %v1112_v15 }
 0x114   : > { %1673 = vmatpush3.bf16.msra.mxu0 %v1112_v15 }
 0x116   : > { %1663 = vmatmul.mubr.msk.bf16.vlgmr.msra.gmra.mrb[12].mxu1 %vm455_vm0, %v769_v10  ;;  %v1652_v10 = vpop.f32.mrb[8].mxu0 }
 0x117   : > { %1666 = vmatprep.mubr.msk.bf16.mxu1 %vm455_vm0, %v770_v11  ;;  %v753_v13 = vpop.f32.mrb[9].mxu0  ;;  %v762_v36 = vadd.f32 %v1652_v10, %v1551_v58 }
 0x11e   : > { %1667 = vmatmul.mubr.msk.bf16.gmra.mrb[16].mxu1 %vm455_vm0, %v771_v12 }
 0x1e9   : > { %v1998_v19 = vpop.f32.mrb[12].mxu1 }
 0x1ea   : > { %v2000_v21 = vpop.f32.mrb[13].mxu1  ;;  %v880_v22 = vsel %vm873_vm2, %v1998_v19, -inf }
 0x1eb   : > { %881 = vmax.xlane.f32.xlu1 %v880_v22  ;;  %v2004_v25 = vpop.f32.mrb[14].mxu1  ;;  %v874_v23 = vsel %vm873_vm2, %v2000_v21, -inf  ;;  %v1653_v22 = vpop.f32.mrb[10].mxu0 }
 0x1ec   : > { %875 = vmax.xlane.f32.xlu0 %v874_v23  ;;  %v2008_v26 = vpop.f32.mrb[15].mxu1  ;;  %v883_v24 = vsel %vm873_vm2, %v2004_v25, -inf  ;;  %v765_v37 = vadd.f32 %v1653_v22, %v1551_v58 }
 0x1ed   : > { %v877_v27 = vsel %vm873_vm2, %v2008_v26, -inf }
 0x1ef   : > { %884 = vmax.xlane.f32.xlu1 %v883_v24 }
 0x1f0   : > { %878 = vmax.xlane.f32.xlu0 %v877_v27  ;;  %v756_v27 = vpop.f32.mrb[11].mxu0 }
 0x1f1   : > { %v2014_v28 = vpop.f32.mrb[16].mxu1 }
 0x1f2   : > { %v2016_v29 = vpop.f32.mrb[17].mxu1  ;;  %v892_v34 = vsel %vm873_vm2, %v2014_v28, -inf }
 0x1f3   : > { %v2018_v30 = vpop.f32.mrb[18].mxu1  ;;  %v886_v31 = vsel %vm873_vm2, %v2016_v29, -inf }
 0x1f4   : > { %887 = vmax.xlane.f32.xlu0 %v886_v31  ;;  %v2022_v32 = vpop.f32.mrb[19].mxu1  ;;  %v895_v35 = vsel %vm873_vm2, %v2018_v30, -inf  ;;  %v754_v31 = vadd.f32 %v1551_v58, %v753_v13 }
 0x1f5   : > { %v889_v33 = vsel %vm873_vm2, %v2022_v32, -inf }
 0x1f6   : > { %890 = vmax.xlane.f32.xlu1 %v889_v33  ;;  %v757_v33 = vadd.f32 %v1551_v58, %v756_v27 }
 0x1f8   : > { %893 = vmax.xlane.f32.xlu0 %v892_v34 }
 0x1fa   : > { %896 = vmax.xlane.f32.xlu1 %v895_v35  ;;  %v1113_v35 = vpack.c.bf16 %v757_v33, %v754_v31 }
 0x1fc   : > { %1674 = vmatprep.subr.bf16.mxu0 %v1113_v35 }
 0x1fd   : > { %1675 = vmatpush3.bf16.msra.mxu0 %v1113_v35 }
 0x278   : > { %v882_v40 = vpop.xlane.xlu1 %881 }
 0x279   : > { %v2051_v41 = vmax.f32 %v2046_v38, %v882_v40  ;;  %v876_v42 = vpop.xlane.xlu0 %875  ;;  %v1114_v40 = vpack.c.bf16 %v765_v37, %v762_v36 }
 0x27a   : > { %v2054_v43 = vmax.f32 %v2048_v39, %v876_v42 }
 0x27b   : > { %v908_v45 = vsub.f32 %v2046_v38, %v2051_v41  ;;  %1210 = vst.msk [vmem:[#allocation3 + $0x10] sm:$0xff] %vm549_vm1, %v2051_v41  ;;  %942 = vperm.xlu1 %1734, %v2051_v41   ;;  %1676 = vmatprep.subr.bf16.mxu0 %v1114_v40 }
 0x27c   : > { %v906_v47 = vsub.f32 %v2048_v39, %v2054_v43  ;;  %1208 = vst.msk [vmem:[#allocation3] sm:$0xff] %vm549_vm1, %v2054_v43  ;;  %v885_v48 = vpop.xlane.xlu1 %884  ;;  %932 = vperm.xlu0 %1733, %v2054_v43   ;;  %1677 = vmatpush3.bf16.msra.mxu0 %v1114_v40 }
 0x27d   : > { %v2071_v49 = vmax.f32 %v2056_v44, %v885_v48  ;;  %v879_v50 = vpop.xlane.xlu0 %878 }
 0x27e   : > { %v2074_v52 = vmax.f32 %v2063_v46, %v879_v50 }
 0x27f   : > { %v909_v54 = vsub.f32 %v2056_v44, %v2071_v49  ;;  %1211 = vst.msk [vmem:[#allocation3 + $0x18] sm:$0xff] %vm549_vm1, %v2071_v49  ;;  %947 = vperm.xlu1 %1734, %v2071_v49  }
 0x280   : > { %v907_v57 = vsub.f32 %v2063_v46, %v2074_v52  ;;  %1209 = vst.msk [vmem:[#allocation3 + $0x8] sm:$0xff] %vm549_vm1, %v2074_v52 }
 0x281   : > { %v888_v60 = vpop.xlane.xlu0 %887 }
 0x282   : > { %v2093_v0 = vmax.f32 %v2081_v55, %v888_v60 }
 0x283   : > { %937 = vperm.xlu1 %1734, %v2074_v52   ;;  %v891_v1 = vpop.xlane.xlu1 %890 }
 0x284   : > { %v910_v5 = vsub.f32 %v2081_v55, %v2093_v0  ;;  %1212 = vst.msk [vmem:[#allocation3 + $0x20] sm:$0xff] %vm549_vm1, %v2093_v0  ;;  %v2103_v6 = vmax.f32 %v2090_v61, %v891_v1 }
 0x285   : > { %v894_v7 = vpop.xlane.xlu0 %893 }
 0x286   : > { %v911_v11 = vsub.f32 %v2090_v61, %v2103_v6  ;;  %1213 = vst.msk [vmem:[#allocation3 + $0x28] sm:$0xff] %vm549_vm1, %v2103_v6  ;;  %v2112_v12 = vmax.f32 %v2096_v2, %v894_v7  ;;  %v922_v46 = vmul.f32 1.442695, %v910_v5 }
 0x287   : > { %v897_v14 = vpop.xlane.xlu1 %896 }
 0x288   : > { %v912_v23 = vsub.f32 %v2096_v2, %v2112_v12  ;;  %1214 = vst.msk [vmem:[#allocation3 + $0x30] sm:$0xff] %vm549_vm1, %v2112_v12  ;;  %v2119_v24 = vmax.f32 %v2105_v8, %v897_v14  ;;  %962 = vperm.xlu1 %1734, %v2112_v12   ;;  %v924_v39 = vmul.f32 1.442695, %v911_v11  ;;  %v997_v2 = vld [vmem:[#allocation4 + $0x18] sm:$0xff] }
 0x28a   : > { %v913_v34 = vsub.f32 %v2105_v8, %v2119_v24  ;;  %1215 = vst.msk [vmem:[#allocation3 + $0x38] sm:$0xff] %vm549_vm1, %v2119_v24  ;;  %v926_v38 = vmul.f32 1.442695, %v912_v23  ;;  %v995_v8 = vld [vmem:[#allocation4 + $0x8] sm:$0xff] }
 0x28c   : > { %952 = vperm.xlu1 %1734, %v2093_v0   ;;  %v928_v41 = vmul.f32 1.442695, %v913_v34  ;;  %v996_v34 = vld [vmem:[#allocation4 + $0x10] sm:$0xff] }
 0x290   : > { %957 = vperm.xlu1 %1734, %v2103_v6  }
 0x294   : > { %967 = vperm.xlu1 %1734, %v2119_v24  }
 0x2fa   : > { %v943_v42 = vpop.permute.xlu1 %942 }
 0x2fb   : > { %v972_v48 = vsub.f32 %v1998_v19, %v943_v42  ;;  %v933_v50 = vpop.permute.xlu0 %932 }
 0x2fc   : > { %v970_v51 = vsub.f32 %v2000_v21, %v933_v50 }
 0x2fd   : > { %v982_v53 = vmul.f32 1.442695, %v972_v48 }
 0x2fe   : > { %v978_v56 = vmul.f32 1.442695, %v970_v51  ;;  %v948_v59 = vpop.permute.xlu1 %947 }
 0x2ff   : > { %v973_v58 = vsub.f32 %v2004_v25, %v948_v59 }
 0x300   : > { %1743 = vpow2.f32 %v978_v56 }
 0x301   : > { %v984_v60 = vmul.f32 1.442695, %v973_v58  ;;  %1745 = vpow2.f32 %v982_v53 }
 0x302   : > { %v938_v62 = vpop.permute.xlu1 %937 }
 0x303   : > { %1747 = vpow2.f32 %v984_v60  ;;  %v971_v63 = vsub.f32 %v2008_v26, %v938_v62  ;;  %v916_v60 = vmul.f32 1.442695, %v907_v57  ;;  %v914_v62 = vmul.f32 1.442695, %v906_v47  ;;  %v994_v57 = vld [vmem:[#allocation4] sm:$0xff] }
 0x305   : > { %v980_v1 = vmul.f32 1.442695, %v971_v63  ;;  %v918_v63 = vmul.f32 1.442695, %v908_v45 }
 0x307   : > { %1749 = vpow2.f32 %v980_v1  ;;  %v963_v3 = vpop.permute.xlu1 %962  ;;  %v920_v1 = vmul.f32 1.442695, %v909_v54 }
 0x308   : > { %v976_v19 = vsub.f32 %v2014_v28, %v963_v3 }
 0x30a   : > { %v1744_v4 = vpop.eup %1743  ;;  %v990_v14 = vmul.f32 1.442695, %v976_v19 }
 0x30b   : > { %v953_v7 = vpop.permute.xlu1 %952  ;;  %v1010_v21 = vsel %vm873_vm2, %v1744_v4, 0.0  ;;  %v1746_v9 = vpop.eup %1745 }
 0x30c   : > { %v974_v10 = vsub.f32 %v2016_v29, %v953_v7  ;;  %1011 = vadd.xlane.f32.xlu1 %v1010_v21  ;;  %v1016_v40 = vsel %vm873_vm2, %v1746_v9, 0.0 }
 0x30d   : > { %v1748_v25 = vpop.eup %1747 }
 0x30e   : > { %v1108_v13 = vpack.c.bf16 %v1748_v25, %v1746_v9  ;;  %v986_v15 = vmul.f32 1.442695, %v974_v10  ;;  %v1019_v22 = vsel %vm873_vm2, %v1748_v25, 0.0  ;;  %v998_v9 = vld [vmem:[#allocation4 + $0x20] sm:$0xff] }
 0x30f   : > { %v958_v26 = vpop.permute.xlu1 %957 }
 0x310   : > { %1751 = vpow2.f32 %v986_v15  ;;  %v975_v27 = vsub.f32 %v2022_v32, %v958_v26  ;;  %1020 = vadd.xlane.f32.xlu1 %v1019_v22 }
 0x311   : > { %v1750_v31 = vpop.eup %1749  ;;  %1753 = vpow2.f32 %v990_v14  ;;  %v999_v14 = vld [vmem:[#allocation4 + $0x28] sm:$0xff] }
 0x312   : > { %v988_v28 = vmul.f32 1.442695, %v975_v27  ;;  %v1013_v33 = vsel %vm873_vm2, %v1750_v31, 0.0  ;;  %v1107_v35 = vpack.c.bf16 %v1750_v31, %v1744_v4 }
 0x313   : > { %1014 = vadd.xlane.f32.xlu0 %v1013_v33  ;;  %v968_v29 = vpop.permute.xlu1 %967 }
 0x314   : > { %1755 = vpow2.f32 %v988_v28  ;;  %v977_v36 = vsub.f32 %v2018_v30, %v968_v29  ;;  %1678 = vmatprep.mubr.msk.bf16.mxu0 %vm873_vm2, %v1107_v35  ;;  %v1001_v35 = vld [vmem:[#allocation4 + $0x38] sm:$0xff] }
 0x315   : > { %1679 = vmatmul.mubr.msk.bf16.vlgmr.msra.gmra.mrb[12].mxu0 %vm873_vm2, %v1108_v13  ;;  %v1000_v13 = vld [vmem:[#allocation4 + $0x30] sm:$0xff] }
 0x316   : > { %v992_v37 = vmul.f32 1.442695, %v977_v36 }
 0x317   : > { %1017 = vadd.xlane.f32.xlu0 %v1016_v40 }
 0x318   : > { %1757 = vpow2.f32 %v992_v37 }
 0x319   : > { %1759 = vpow2.f32 %v916_v60  ;;  %v1742_v60 = vld [vmem:[%s2246_s5 + $0x8] sm:$0xff]  }
 0x31a   : > { %v1752_v32 = vpop.eup %1751  ;;  %1761 = vpow2.f32 %v914_v62 }
 0x31b   : > { %v1022_v42 = vsel %vm873_vm2, %v1752_v32, 0.0  ;;  %v1754_v48 = vpop.eup %1753  ;;  %1763 = vpow2.f32 %v918_v63 }
 0x31c   : > { %1023 = vadd.xlane.f32.xlu0 %v1022_v42  ;;  %v1028_v51 = vsel %vm873_vm2, %v1754_v48, 0.0  ;;  %1765 = vpow2.f32 %v920_v1 }
 0x31d   : > { %1767 = vpow2.f32 %v922_v46 }
 0x31e   : > { %v1756_v50 = vpop.eup %1755  ;;  %1769 = vpow2.f32 %v924_v39 }
 0x31f   : > { %v1025_v53 = vsel %vm873_vm2, %v1756_v50, 0.0  ;;  %v1109_v30 = vpack.c.bf16 %v1756_v50, %v1752_v32  ;;  %1771 = vpow2.f32 %v926_v38  ;;  %v1741_v32 = vld [vmem:[%s2246_s5] sm:$0xff]  }
 0x320   : > { %1029 = vadd.xlane.f32.xlu0 %v1028_v51  ;;  %1026 = vadd.xlane.f32.xlu1 %v1025_v53  ;;  %1773 = vpow2.f32 %v928_v41 }
 0x321   : > { %1682 = vmatprep.mubr.msk.bf16.mxu0 %vm873_vm2, %v1109_v30  ;;  %1686 = vmatprep.subr.bf16.mxu0 %v1741_v32 }
 0x322   : > { %v1758_v56 = vpop.eup %1757  ;;  %1687 = vmatpush3.bf16.msra.mxu0 %v1741_v32 }
 0x323   : > { %v1031_v59 = vsel %vm873_vm2, %v1758_v56, 0.0  ;;  %v1110_v58 = vpack.c.bf16 %v1758_v56, %v1754_v48  ;;  %v1760_v43 = vpop.eup %1759  ;;  %1688 = vmatprep.subr.bf16.mxu0 %v1742_v60 }
 0x324   : > { %1032 = vadd.xlane.f32.xlu1 %v1031_v59  ;;  %v1762_v44 = vpop.eup %1761  ;;  %v1003_v23 = vmul.f32 %v1760_v43, %v995_v8 }
 0x325   : > { %1683 = vmatmul.mubr.msk.bf16.gmra.mrb[16].mxu0 %vm873_vm2, %v1110_v58  ;;  %v1764_v45 = vpop.eup %1763  ;;  %v1002_v61 = vmul.f32 %v1762_v44, %v994_v57 }
 0x326   : > { %v1766_v47 = vpop.eup %1765  ;;  %v1004_v4 = vmul.f32 %v1764_v45, %v996_v34  ;;  %1689 = vmatpush3.bf16.msra.mxu0 %v1742_v60 }
 0x327   : > { %v1768_v49 = vpop.eup %1767  ;;  %v1005_v6 = vmul.f32 %v1766_v47, %v997_v2 }
 0x328   : > { %v1770_v52 = vpop.eup %1769  ;;  %v1006_v10 = vmul.f32 %v1768_v49, %v998_v9  ;;  %v1056_v9 = vld [vmem:[#allocation5 + $0x28] sm:$0xff] }
 0x329   : > { %v1772_v54 = vpop.eup %1771  ;;  %v1007_v31 = vmul.f32 %v1770_v52, %v999_v14 }
 0x32a   : > { %v1774_v55 = vpop.eup %1773  ;;  %v1008_v27 = vmul.f32 %v1772_v54, %v1000_v13 }
 0x32b   : > { %v1009_v42 = vmul.f32 %v1774_v55, %v1001_v35 }
 0x335   : > { %1066 = vperm.xlu1 %1734, %v1760_v43   ;;  %v1053_v43 = vld [vmem:[#allocation5 + $0x10] sm:$0xff] }
 0x336   : > { %1061 = vperm.xlu0 %1733, %v1762_v44  }
 0x339   : > { %1071 = vperm.xlu1 %1734, %v1764_v45   ;;  %v1051_v45 = vld [vmem:[#allocation5] sm:$0xff] }
 0x33a   : > { %1076 = vperm.xlu0 %1733, %v1766_v47   ;;  %v1054_v47 = vld [vmem:[#allocation5 + $0x18] sm:$0xff] }
 0x33d   : > { %1081 = vperm.xlu1 %1734, %v1768_v49  }
 0x33e   : > { %1086 = vperm.xlu0 %1733, %v1770_v52   ;;  %v1052_v52 = vld [vmem:[#allocation5 + $0x8] sm:$0xff] }
 0x341   : > { %1091 = vperm.xlu1 %1734, %v1772_v54  }
 0x342   : > { %1096 = vperm.xlu0 %1733, %v1774_v55  }
 0x399   : > { %v1012_v0 = vpop.xlane.xlu1 %1011 }
 0x39a   : > { %v1034_v5 = vadd.f32 %v1012_v0, %v1002_v61 }
 0x39c   : > { %1043 = vst.msk [vmem:[#allocation4] sm:$0xff] %vm549_vm1, %v1034_v5 }
 0x39d   : > { %v1021_v11 = vpop.xlane.xlu1 %1020 }
 0x39e   : > { %v1037_v12 = vadd.f32 %v1021_v11, %v1005_v6 }
 0x3a0   : > { %1046 = vst.msk [vmem:[#allocation4 + $0x18] sm:$0xff] %vm549_vm1, %v1037_v12  ;;  %v1015_v24 = vpop.xlane.xlu0 %1014 }
 0x3a1   : > { %v1035_v3 = vadd.f32 %v1015_v24, %v1003_v23 }
 0x3a3   : > { %1044 = vst.msk [vmem:[#allocation4 + $0x8] sm:$0xff] %vm549_vm1, %v1035_v3  ;;  %v1227_v19 = vld [vmem:[#allocation4] sm:$0xff]  ;;  %v1057_v3 = vld [vmem:[#allocation5 + $0x30] sm:$0xff] }
 0x3a4   : > { %v1018_v7 = vpop.xlane.xlu0 %1017  ;;  %1775 = vrcp.f32 %v1227_v19  ;;  %v1055_v19 = vld [vmem:[#allocation5 + $0x20] sm:$0xff] }
 0x3a5   : > { %v1036_v21 = vadd.f32 %v1018_v7, %v1004_v4  ;;  %v1058_v7 = vld [vmem:[#allocation5 + $0x38] sm:$0xff] }
 0x3a7   : > { %1045 = vst.msk [vmem:[#allocation4 + $0x10] sm:$0xff] %vm549_vm1, %v1036_v21  ;;  %v1230_v26 = vld [vmem:[#allocation4 + $0x18] sm:$0xff] }
 0x3a9   : > { %v1024_v25 = vpop.xlane.xlu0 %1023 }
 0x3aa   : > { %v1038_v15 = vadd.f32 %v1024_v25, %v1006_v10  ;;  %v1228_v22 = vld [vmem:[#allocation4 + $0x8] sm:$0xff] }
 0x3ab   : > { %1777 = vrcp.f32 %v1228_v22 }
 0x3ac   : > { %1047 = vst.msk [vmem:[#allocation4 + $0x20] sm:$0xff] %vm549_vm1, %v1038_v15  ;;  %1779 = vrcp.f32 %v1230_v26 }
 0x3ad   : > { %v1030_v28 = vpop.xlane.xlu0 %1029  ;;  %v1027_v33 = vpop.xlane.xlu1 %1026 }
 0x3ae   : > { %v1776_v29 = vpop.eup %1775  ;;  %v1040_v36 = vadd.f32 %v1030_v28, %v1008_v27  ;;  %v1039_v37 = vadd.f32 %v1027_v33, %v1007_v31  ;;  %v1229_v40 = vld [vmem:[#allocation4 + $0x10] sm:$0xff] }
 0x3af   : > { %1245 = vperm.xlu1 %1734, %v1776_v29   ;;  %1781 = vrcp.f32 %v1229_v40 }
 0x3b0   : > { %1049 = vst.msk [vmem:[#allocation4 + $0x30] sm:$0xff] %vm549_vm1, %v1040_v36  ;;  %1048 = vst.msk [vmem:[#allocation4 + $0x28] sm:$0xff] %vm549_vm1, %v1039_v37 }
 0x3b1   : > { %v1033_v48 = vpop.xlane.xlu1 %1032 }
 0x3b2   : > { %v1041_v50 = vadd.f32 %v1033_v48, %v1009_v42 }
 0x3b3   : > { %v1231_v51 = vld [vmem:[#allocation4 + $0x20] sm:$0xff] }
 0x3b4   : > { %1050 = vst.msk [vmem:[#allocation4 + $0x38] sm:$0xff] %vm549_vm1, %v1041_v50  ;;  %1783 = vrcp.f32 %v1231_v51 }
 0x3b5   : > { %v1778_v53 = vpop.eup %1777  ;;  %v1067_v38 = vpop.permute.xlu1 %1066 }
 0x3b6   : > { %1250 = vperm.xlu0 %1733, %v1778_v53   ;;  %v1780_v59 = vpop.eup %1779  ;;  %v1062_v41 = vpop.permute.xlu0 %1061  ;;  %v1100_v5 = vmul.f32 %v1067_v38, %v1052_v52 }
 0x3b7   : > { %v1233_v30 = vld [vmem:[#allocation4 + $0x30] sm:$0xff]  ;;  %v1232_v56 = vld [vmem:[#allocation4 + $0x28] sm:$0xff]  ;;  %v1099_v55 = vmul.f32 %v1062_v41, %v1051_v45 }
 0x3b8   : > { %1785 = vrcp.f32 %v1233_v30 }
 0x3b9   : > { %v1782_v58 = vpop.eup %1781  ;;  %1787 = vrcp.f32 %v1232_v56  ;;  %v1072_v44 = vpop.permute.xlu1 %1071 }
 0x3ba   : > { %1255 = vperm.xlu1 %1734, %v1782_v58   ;;  %1260 = vperm.xlu0 %1733, %v1780_v59   ;;  %v1077_v49 = vpop.permute.xlu0 %1076  ;;  %v1101_v54 = vmul.f32 %v1072_v44, %v1053_v43 }
 0x3bb   : > { %v1234_v62 = vld [vmem:[#allocation4 + $0x38] sm:$0xff]  ;;  %v1102_v61 = vmul.f32 %v1077_v49, %v1054_v47 }
 0x3bc   : > { %1789 = vrcp.f32 %v1234_v62 }
 0x3bd   : > { %v1082_v24 = vpop.permute.xlu1 %1081 }
 0x3be   : > { %v1784_v63 = vpop.eup %1783  ;;  %v1087_v34 = vpop.permute.xlu0 %1086  ;;  %v1103_v25 = vmul.f32 %v1082_v24, %v1055_v19 }
 0x3bf   : > { %1265 = vperm.xlu1 %1734, %v1784_v63   ;;  %v1104_v26 = vmul.f32 %v1087_v34, %v1056_v9 }
 0x3c1   : > { %v1092_v4 = vpop.permute.xlu1 %1091 }
 0x3c2   : > { %v1786_v1 = vpop.eup %1785  ;;  %v1097_v21 = vpop.permute.xlu0 %1096  ;;  %v1105_v10 = vmul.f32 %v1092_v4, %v1057_v3 }
 0x3c3   : > { %v1788_v46 = vpop.eup %1787  ;;  %1275 = vperm.xlu1 %1734, %v1786_v1   ;;  %v1106_v14 = vmul.f32 %v1097_v21, %v1058_v7  ;;  %v1791_v7 = vld [vmem:[%s1902_s22 + $0x30] sm:$0xff] }
 0x3c4   : > { %1270 = vperm.xlu0 %1733, %v1788_v46  }
 0x3c6   : > { %v1790_v39 = vpop.eup %1789 }
 0x3c8   : > { %1280 = vperm.xlu0 %1733, %v1790_v39  }
 0x3e8   : > { %v1680_v57 = vpop.f32.mrb[12].mxu0 }
 0x3e9   : > { %v1194_v0 = vadd.f32 %v1680_v57, %v1101_v54  ;;  %v1161_v2 = vpop.f32.mrb[13].mxu0  ;;  %v1566_v54 = vld [vmem:[%s2249_s8] ss:$0 sm:$0xff] }
 0x3ea   : > { %v1192_v6 = vadd.f32 %v1161_v2, %v1099_v55  ;;  %v1681_v8 = vpop.f32.mrb[14].mxu0 }
 0x3eb   : > { %1202 = vst.msk [vmem:[#allocation5 + $0x10] sm:$0xff] %vm455_vm0, %v1194_v0  ;;  %v1195_v11 = vadd.f32 %v1681_v8, %v1102_v61  ;;  %v1164_v12 = vpop.f32.mrb[15].mxu0 }
 0x3ec   : > { %1200 = vst.msk [vmem:[#allocation5] sm:$0xff] %vm455_vm0, %v1192_v6  ;;  %v1193_v23 = vadd.f32 %v1164_v12, %v1100_v5 }
 0x3ed   : > { %1203 = vst.msk [vmem:[#allocation5 + $0x18] sm:$0xff] %vm455_vm0, %v1195_v11 }
 0x3ee   : > { %1201 = vst.msk [vmem:[#allocation5 + $0x8] sm:$0xff] %vm455_vm0, %v1193_v23 }
 0x3f2   : > { %v1221_v53 = vld [vmem:[#allocation5 + $0x10] sm:$0xff] }
 0x3f3   : > { %v1219_v36 = vld [vmem:[#allocation5] sm:$0xff] }
 0x3f4   : > { %v1222_v50 = vld [vmem:[#allocation5 + $0x18] sm:$0xff] }
 0x3f5   : > { %v1220_v40 = vld [vmem:[#allocation5 + $0x8] sm:$0xff] }
 0x3f8   : > { %v1684_v13 = vpop.f32.mrb[16].mxu0 }
 0x3f9   : > { %v1198_v15 = vadd.f32 %v1684_v13, %v1105_v10  ;;  %v1177_v22 = vpop.f32.mrb[17].mxu0 }
 0x3fa   : > { %v1196_v27 = vadd.f32 %v1177_v22, %v1103_v25  ;;  %v1685_v31 = vpop.f32.mrb[18].mxu0 }
 0x3fb   : > { %1206 = vst.msk [vmem:[#allocation5 + $0x30] sm:$0xff] %vm455_vm0, %v1198_v15  ;;  %v1199_v28 = vadd.f32 %v1685_v31, %v1106_v14  ;;  %v1180_v33 = vpop.f32.mrb[19].mxu0 }
 0x3fc   : > { %1204 = vst.msk [vmem:[#allocation5 + $0x20] sm:$0xff] %vm455_vm0, %v1196_v27  ;;  %v1197_v35 = vadd.f32 %v1180_v33, %v1104_v26 }
 0x3fd   : > { %1207 = vst.msk [vmem:[#allocation5 + $0x38] sm:$0xff] %vm455_vm0, %v1199_v28 }
 0x3fe   : > { %1205 = vst.msk [vmem:[#allocation5 + $0x28] sm:$0xff] %vm455_vm0, %v1197_v35 }
 0x402   : > { %v1225_v43 = vld [vmem:[#allocation5 + $0x30] sm:$0xff] }
 0x403   : > { %v1223_v62 = vld [vmem:[#allocation5 + $0x20] sm:$0xff] }
 0x404   : > { %v1226_v44 = vld [vmem:[#allocation5 + $0x38] sm:$0xff] }
 0x405   : > { %v1224_v63 = vld [vmem:[#allocation5 + $0x28] sm:$0xff] }
 0x42e   : > { %v1246_v29 = vpop.permute.xlu1 %1245 }
 0x42f   : > { %v1283_v32 = vmul.f32 %v1246_v29, %v1219_v36 }
 0x435   : > { %v1251_v37 = vpop.permute.xlu0 %1250 }
 0x436   : > { %v1284_v42 = vmul.f32 %v1251_v37, %v1220_v40 }
 0x438   : > { %v1291_v48 = vpack.c.bf16 %v1284_v42, %v1283_v32 }
 0x439   : > { %v1261_v51 = vpop.permute.xlu0 %1260  ;;  %v1256_v30 = vpop.permute.xlu1 %1255 }
 0x43a   : > { %v1286_v56 = vmul.f32 %v1261_v51, %v1222_v50  ;;  %v1285_v59 = vmul.f32 %v1256_v30, %v1221_v53  ;;  %1690 = vmatprep.mubr.msk.bf16.mxu0 %vm455_vm0, %v1291_v48 }
 0x43c   : > { %v1292_v58 = vpack.c.bf16 %v1286_v56, %v1285_v59 }
 0x43e   : > { %1691 = vmatmul.mubr.msk.bf16.vlgmr.msra.gmra.mrb[20].mxu0 %vm455_vm0, %v1292_v58  ;;  %v1266_v60 = vpop.permute.xlu1 %1265 }
 0x43f   : > { %v1287_v46 = vmul.f32 %v1266_v60, %v1223_v62 }
 0x442   : > { %v1276_v38 = vpop.permute.xlu1 %1275 }
 0x443   : > { %v1271_v1 = vpop.permute.xlu0 %1270  ;;  %v1289_v47 = vmul.f32 %v1276_v38, %v1225_v43 }
 0x444   : > { %v1288_v39 = vmul.f32 %v1271_v1, %v1224_v63 }
 0x446   : > { %v1293_v41 = vpack.c.bf16 %v1288_v39, %v1287_v46 }
 0x447   : > { %v1281_v45 = vpop.permute.xlu0 %1280 }
 0x448   : > { %v1290_v49 = vmul.f32 %v1281_v45, %v1226_v44  ;;  %1694 = vmatprep.mubr.msk.bf16.mxu0 %vm455_vm0, %v1293_v41 }
 0x44a   : > { %v1294_v52 = vpack.c.bf16 %v1290_v49, %v1289_v47 }
 0x44c   : > { %1695 = vmatmul.mubr.msk.bf16.gmra.mrb[24].mxu0 %vm455_vm0, %v1294_v52 }
 0x511   : > { %v1692_v55 = vpop.f32.mrb[20].mxu0 }
 0x512   : > { %v1373_v57 = vadd.f32 %v1692_v55, %v1566_v54  ;;  %v1364_v61 = vpop.f32.mrb[21].mxu0 }
 0x513   : > { %v1365_v0 = vadd.f32 %v1566_v54, %v1364_v61  ;;  %v1693_v2 = vpop.f32.mrb[22].mxu0 }
 0x514   : > { %v1405_v5 = vadd.f32 %v1373_v57, %v1931_v18  ;;  %v1376_v6 = vadd.f32 %v1693_v2, %v1566_v54  ;;  %v1367_v8 = vpop.f32.mrb[23].mxu0 }
 0x515   : > { %v1403_v11 = vadd.f32 %v1365_v0, %v1925_v16  ;;  %v1368_v12 = vadd.f32 %v1566_v54, %v1367_v8  ;;  %v1399_v16 = vld [vmem:[%s1902_s22 + $0x20] sm:$0xff] }
 0x516   : > { %1413 = vst.msk [vmem:[%s2206_s28 + $0x10] sm:$0xff] %vm455_vm0, %v1405_v5  ;;  %v1406_v23 = vadd.f32 %v1376_v6, %v1937_v20  ;;  %v1402_v20 = vld [vmem:[%s1902_s22 + $0x38] sm:$0xff] }
 0x517   : > { %1411 = vst.msk [vmem:[%s2206_s28] sm:$0xff] %vm455_vm0, %v1403_v11  ;;  %v1404_v24 = vadd.f32 %v1368_v12, %v1928_v17  ;;  %v1400_v17 = vld [vmem:[%s1902_s22 + $0x28] sm:$0xff] }
 0x518   : > { %1414 = vst.msk [vmem:[%s2206_s28 + $0x18] sm:$0xff] %vm455_vm0, %v1406_v23 }
 0x519   : > { %1412 = vst.msk [vmem:[%s2206_s28 + $0x8] sm:$0xff] %vm455_vm0, %v1404_v24 }
 0x51f   : > { %v1696_v18 = vpop.f32.mrb[24].mxu0 }
 0x520   : > { %v1389_v34 = vadd.f32 %v1696_v18, %v1566_v54  ;;  %v1380_v3 = vpop.f32.mrb[25].mxu0 }
 0x521   : > { %v1381_v4 = vadd.f32 %v1566_v54, %v1380_v3  ;;  %v1697_v19 = vpop.f32.mrb[26].mxu0 }
 0x522   : > { %v1409_v21 = vadd.f32 %v1791_v7, %v1389_v34  ;;  %v1392_v9 = vadd.f32 %v1697_v19, %v1566_v54  ;;  %v1383_v10 = vpop.f32.mrb[27].mxu0 }
 0x523   : > { %v1407_v25 = vadd.f32 %v1399_v16, %v1381_v4  ;;  %v1384_v13 = vadd.f32 %v1566_v54, %v1383_v10 }
 0x524   : > { %1417 = vst.msk [vmem:[%s2206_s28 + $0x30] sm:$0xff] %vm455_vm0, %v1409_v21  ;;  %v1410_v14 = vadd.f32 %v1402_v20, %v1392_v9 }
 0x525   : > { %1415 = vst.msk [vmem:[%s2206_s28 + $0x20] sm:$0xff] %vm455_vm0, %v1407_v25  ;;  %v1408_v15 = vadd.f32 %v1400_v17, %v1384_v13 }
 0x526   : > { %1418 = vst.msk [vmem:[%s2206_s28 + $0x38] sm:$0xff] %vm455_vm0, %v1410_v14 }
 0x527   : > { %1416 = vst.msk [vmem:[%s2206_s28 + $0x28] sm:$0xff] %vm455_vm0, %v1408_v15 }
 0x528 PF: > { %s19_s11 = sadd.s32 1, %s1814_s11   ;;  %s2251_s30 = smov %s1810_s10 }
 0x529   : > { %p16_p5 = scmp.ge.s32.totalorder %s19_s11, 4   ;;  %s2252_s10 = smov %s2254_s12 }
 0x52b   :  { %18 = sbr.rel (!%p16_p5) target bundleno = 2 (0x2), region = 97 }

</bundles_post_ra>
